<compile_context>
chip_gen: v5e
topology: v5e:2x2
jax: 0.10.0
libtpu: 0.0.40
codegen_flags: <defaults>
</compile_context>

<pallas_src>
import functools

import jax
import jax.numpy as jnp
from jax.experimental import pallas as pl
from jax.experimental.pallas import tpu as pltpu


def _transition_kernel(x_ref, scale_ref, bias_ref, w_ref, o_ref):
    # x_ref:     (1, 2, 2, T, Cin) bf16  four 2x2-window taps for T pooled pixels
    # scale_ref: (1, Cin) f32            0.25 * gamma / sqrt(var + eps)
    # bias_ref:  (1, Cin) f32            0.25 * (beta - mean * gamma / sqrt(var+eps))
    # w_ref:     (Cin, Cout_pad) bf16    1x1 conv weight, lane-padded
    # o_ref:     (1, T, Cout_pad) f32
    v = x_ref[0].astype(jnp.float32)                      # (2, 2, T, Cin), f32 VPU math
    # One scale/bias broadcast over all four taps, fused BN + ReLU.
    h = jnp.maximum(v * scale_ref[...] + bias_ref[...], 0.0)
    # 2x2 average pool == sum of the 4 taps (1/4 already folded into scale/bias).
    hp = (h[0, 0] + h[0, 1]) + (h[1, 0] + h[1, 1])        # (T, Cin) f32
    # 1x1 conv: single bf16 MXU matmul with f32 accumulation.
    o_ref[0] = jnp.dot(hp.astype(jnp.bfloat16), w_ref[...],
                       preferred_element_type=jnp.float32).astype(o_ref.dtype)


def _pick_pixel_tile(hwo, cin, cout_pad, n,
                     in_budget=4 * 1024 * 1024, out_budget=4 * 1024 * 1024):
    """Spatial tile T (in pooled pixels): a multiple of 16 (bf16 sublane packing)
    sized from a VMEM byte budget, shrunk if needed so the grid has >= 4 total
    steps (keeps both v7x TensorCores pipelined).  Ho*Wo is padded up to a
    multiple of T in the wrapper, so T need not divide Ho*Wo."""
    g = 16
    hwo_g = -(-hwo // g) * g
    t_in = in_budget // (4 * cin * 2)          # 4 taps * T * Cin * bf16
    t_out = out_budget // (cout_pad * 4)       # T * Cout_pad * f32
    t = max(g, (min(t_in, t_out) // g) * g)
    t = min(t, hwo_g)
    min_tiles = -(-4 // max(n, 1))             # want N * tiles >= 4
    if -(-hwo_g // t) < min_tiles:
        t = max(g, ((hwo_g // min_tiles) // g) * g)
    return t


@functools.partial(jax.jit, static_argnames=("eps", "single_buffer_consts"))
def transition_forward(x_nchw, gamma, beta, run_mean, run_var, conv_w,
                       eps=1e-5, single_buffer_consts=True):
    """x_nchw: (N, Cin, H, W) f32; conv_w: (Cout, Cin, 1, 1).
    Returns (N, Cout, H//2, W//2) f32 (PyTorch module, eval-mode BN)."""
    N, Cin, H, W = x_nchw.shape
    Cout = conv_w.shape[0]
    assert H % 2 == 0 and W % 2 == 0, "avg_pool2d(2) path assumes even H, W"
    Ho, Wo = H // 2, W // 2
    HWo = Ho * Wo

    Cout_pad = -(-Cout // 128) * 128                       # lane-dense output stores
    T = _pick_pixel_tile(HWo, Cin, Cout_pad, N)
    HWo_pad = -(-HWo // T) * T

    # ---- glue: layout + parameter folding (one XLA copy of x, cast fused) --
    # (N,Cin,H,W) -> (N, dh, dw, Ho*Wo, Cin): the 2x2 taps go to leading axes.
    x_taps = jnp.transpose(
        x_nchw.reshape(N, Cin, Ho, 2, Wo, 2), (0, 3, 5, 2, 4, 1)
    ).reshape(N, 2, 2, HWo, Cin).astype(jnp.bfloat16)
    if HWo_pad != HWo:
        x_taps = jnp.pad(
            x_taps, ((0, 0), (0, 0), (0, 0), (0, HWo_pad - HWo), (0, 0)))

    s = gamma / jnp.sqrt(run_var + eps)
    scale = (0.25 * s).reshape(1, Cin).astype(jnp.float32)            # fold pool 1/4
    bias = (0.25 * (beta - run_mean * s)).reshape(1, Cin).astype(jnp.float32)

    w = conv_w.reshape(Cout, Cin).T.astype(jnp.bfloat16)              # (Cin, Cout)
    w = jnp.pad(w, ((0, 0), (0, Cout_pad - Cout)))                    # (Cin, Cout_pad)

    # Constant operands never change block index; one VMEM buffer is enough.
    const_kw = {"pipeline_mode": pl.Buffered(1)} if single_buffer_consts else {}
    in_specs = [
        pl.BlockSpec((1, 2, 2, T, Cin), lambda n, t: (n, 0, 0, t, 0)),
        pl.BlockSpec((1, Cin), lambda n, t: (0, 0), **const_kw),
        pl.BlockSpec((1, Cin), lambda n, t: (0, 0), **const_kw),
        pl.BlockSpec((Cin, Cout_pad), lambda n, t: (0, 0), **const_kw),
    ]

    out_flat = pl.pallas_call(
        _transition_kernel,
        out_shape=jax.ShapeDtypeStruct((N, HWo_pad, Cout_pad), jnp.float32),
        grid_spec=pltpu.PrefetchScalarGridSpec(
            num_scalar_prefetch=0,
            grid=(N, HWo_pad // T),
            in_specs=in_specs,
            out_specs=pl.BlockSpec((1, T, Cout_pad), lambda n, t: (n, t, 0)),
        ),
        compiler_params=pltpu.CompilerParams(
            dimension_semantics=("parallel", "parallel"),
            vmem_limit_bytes=48 * 1024 * 1024,   # <= v7x's 64 MiB physical VMEM
        ),
    )(x_taps, scale, bias, w)

    # ---- glue: drop spatial/channel padding, back to NCHW ------------------
    out = out_flat[:, :HWo, :Cout].reshape(N, Ho, Wo, Cout)
    return jnp.transpose(out, (0, 3, 1, 2))


def _reference(x_nchw, gamma, beta, run_mean, run_var, conv_w, eps=1e-5):
    # Plain-JAX f32 reference of the same (eval-mode) forward pass, in NCHW.
    s = gamma / jnp.sqrt(run_var + eps)
    b = beta - run_mean * s
    h = jnp.maximum(x_nchw * s[None, :, None, None] + b[None, :, None, None], 0.0)
    y = jnp.einsum("nchw,oc->nohw", h, conv_w.reshape(conv_w.shape[0], -1))
    N, Co, H, W = y.shape
    return y.reshape(N, Co, H // 2, 2, W // 2, 2).mean(axis=(3, 5))


if __name__ == "__main__":
    key = jax.random.PRNGKey(0)
    N, Cin, H, W = 2, 4, 16, 16
    Cout = 8

    k = jax.random.split(key, 6)
    x = jax.random.normal(k[0], (N, Cin, H, W), jnp.float32)
    gamma = 1.0 + 0.1 * jax.random.normal(k[1], (Cin,), jnp.float32)
    beta = 0.1 * jax.random.normal(k[2], (Cin,), jnp.float32)
    run_mean = 0.1 * jax.random.normal(k[3], (Cin,), jnp.float32)
    run_var = jnp.abs(1.0 + 0.1 * jax.random.normal(k[4], (Cin,), jnp.float32))
    conv_w = 0.1 * jax.random.normal(k[5], (Cout, Cin, 1, 1), jnp.float32)

    try:
        out = jax.block_until_ready(
            transition_forward(x, gamma, beta, run_mean, run_var, conv_w,
                               single_buffer_consts=True))
    except Exception:
        # Fallback if this JAX build rejects single-buffered BlockSpecs.
        out = jax.block_until_ready(
            transition_forward(x, gamma, beta, run_mean, run_var, conv_w,
                               single_buffer_consts=False))

    ref = _reference(x, gamma, beta, run_mean, run_var, conv_w)
    assert out.shape == (N, Cout, H // 2, W // 2)
    # bf16 tap storage + bf16 MXU matmul (f32 accumulate) => looser tolerance.
    assert jnp.allclose(out, ref, atol=3e-2, rtol=3e-2), float(
        jnp.max(jnp.abs(out - ref)))
    print("KERNEL_OK")
</pallas_src>

<mosaic_0001>
module attributes {stable_mosaic.version = 11 : i64} {
  func.func @_transition_kernel(%arg0: i32, %arg1: i32, %arg2: memref<1x2x2x32x4xbf16, #tpu.memory_space<vmem>>, %arg3: memref<1x4xf32, #tpu.memory_space<vmem>>, %arg4: memref<1x4xf32, #tpu.memory_space<vmem>>, %arg5: memref<4x128xbf16, #tpu.memory_space<vmem>>, %arg6: memref<1x32x128xf32, #tpu.memory_space<vmem>>) attributes {dimension_semantics = [#tpu.dimension_semantics<parallel>, #tpu.dimension_semantics<parallel>], iteration_bounds = array<i64: 2, 2>, scalar_prefetch = 0 : i64, scratch_operands = 0 : i64, tpu.core_type = #tpu.core_type<tc>, window_params = [{transform_indices = @transform_0, window_bounds = array<i64: 1, 2, 2, 32, 4>}, {pipeline_mode = #tpu.pipeline_mode<synchronous>, transform_indices = @transform_1, window_bounds = array<i64: 1, 4>}, {pipeline_mode = #tpu.pipeline_mode<synchronous>, transform_indices = @transform_2, window_bounds = array<i64: 1, 4>}, {pipeline_mode = #tpu.pipeline_mode<synchronous>, transform_indices = @transform_3, window_bounds = array<i64: 4, 128>}, {transform_indices = @transform_4, window_bounds = array<i64: 1, 32, 128>}]} {
    %c0 = arith.constant 0 : index
    %c0_0 = arith.constant 0 : index
    %c0_1 = arith.constant 0 : index
    %c0_2 = arith.constant 0 : index
    %c0_3 = arith.constant 0 : index
    %0 = vector.load %arg2[%c0, %c0_0, %c0_1, %c0_2, %c0_3] : memref<1x2x2x32x4xbf16, #tpu.memory_space<vmem>>, vector<1x2x2x32x4xbf16>
    %1 = vector.shape_cast %0 : vector<1x2x2x32x4xbf16> to vector<2x2x32x4xbf16>
    %2 = arith.extf %1 : vector<2x2x32x4xbf16> to vector<2x2x32x4xf32>
    %c0_4 = arith.constant 0 : index
    %c0_5 = arith.constant 0 : index
    %3 = vector.load %arg3[%c0_4, %c0_5] : memref<1x4xf32, #tpu.memory_space<vmem>>, vector<1x4xf32>
    %4 = vector.shape_cast %3 : vector<1x4xf32> to vector<1x1x1x4xf32>
    %5 = vector.broadcast %4 : vector<1x1x1x4xf32> to vector<2x2x32x4xf32>
    %6 = arith.mulf %2, %5 : vector<2x2x32x4xf32>
    %c0_6 = arith.constant 0 : index
    %c0_7 = arith.constant 0 : index
    %7 = vector.load %arg4[%c0_6, %c0_7] : memref<1x4xf32, #tpu.memory_space<vmem>>, vector<1x4xf32>
    %8 = vector.shape_cast %7 : vector<1x4xf32> to vector<1x1x1x4xf32>
    %9 = vector.broadcast %8 : vector<1x1x1x4xf32> to vector<2x2x32x4xf32>
    %10 = arith.addf %6, %9 : vector<2x2x32x4xf32>
    %cst = arith.constant 0.000000e+00 : f32
    %11 = vector.broadcast %cst : f32 to vector<2x2x32x4xf32>
    %12 = arith.maximumf %10, %11 : vector<2x2x32x4xf32>
    %13 = vector.extract_strided_slice %12 {offsets = [0, 0, 0, 0], sizes = [1, 1, 32, 4], strides = [1, 1, 1, 1]} : vector<2x2x32x4xf32> to vector<1x1x32x4xf32>
    %14 = vector.shape_cast %13 : vector<1x1x32x4xf32> to vector<32x4xf32>
    %15 = vector.extract_strided_slice %12 {offsets = [0, 1, 0, 0], sizes = [1, 1, 32, 4], strides = [1, 1, 1, 1]} : vector<2x2x32x4xf32> to vector<1x1x32x4xf32>
    %16 = vector.shape_cast %15 : vector<1x1x32x4xf32> to vector<32x4xf32>
    %17 = arith.addf %14, %16 : vector<32x4xf32>
    %18 = vector.extract_strided_slice %12 {offsets = [1, 0, 0, 0], sizes = [1, 1, 32, 4], strides = [1, 1, 1, 1]} : vector<2x2x32x4xf32> to vector<1x1x32x4xf32>
    %19 = vector.shape_cast %18 : vector<1x1x32x4xf32> to vector<32x4xf32>
    %20 = vector.extract_strided_slice %12 {offsets = [1, 1, 0, 0], sizes = [1, 1, 32, 4], strides = [1, 1, 1, 1]} : vector<2x2x32x4xf32> to vector<1x1x32x4xf32>
    %21 = vector.shape_cast %20 : vector<1x1x32x4xf32> to vector<32x4xf32>
    %22 = arith.addf %19, %21 : vector<32x4xf32>
    %23 = arith.addf %17, %22 : vector<32x4xf32>
    %24 = arith.truncf %23 : vector<32x4xf32> to vector<32x4xbf16>
    %c0_8 = arith.constant 0 : index
    %c0_9 = arith.constant 0 : index
    %25 = vector.load %arg5[%c0_8, %c0_9] : memref<4x128xbf16, #tpu.memory_space<vmem>>, vector<4x128xbf16>
    %cst_10 = arith.constant dense<0.000000e+00> : vector<32x128xf32>
    %26 = tpu.matmul %24, %25, %cst_10 {dimension_numbers = #tpu.dot_dimension_numbers<[1], [0], [0], [1], [0, 0, 1, 1], [], []>} : vector<32x4xbf16>, vector<4x128xbf16>, vector<32x128xf32> -> vector<32x128xf32>
    %c0_11 = arith.constant 0 : index
    %c0_12 = arith.constant 0 : index
    %c0_13 = arith.constant 0 : index
    %27 = vector.load %arg6[%c0_11, %c0_12, %c0_13] : memref<1x32x128xf32, #tpu.memory_space<vmem>>, vector<1x32x128xf32>
    %28 = vector.shape_cast %27 : vector<1x32x128xf32> to vector<32x128xf32>
    %29 = vector.shape_cast %26 : vector<32x128xf32> to vector<1x32x128xf32>
    tpu.vector_store %arg6[%c0_11, %c0_12, %c0_13], %29 {strides = array<i32>} : memref<1x32x128xf32, #tpu.memory_space<vmem>>, vector<1x32x128xf32>,
    return
  }
  func.func @transform_0(%arg0: i32, %arg1: i32) -> (i32, i32, i32, i32, i32) {
    %c0_i32 = arith.constant 0 : i32
    %c0_i32_0 = arith.constant 0 : i32
    %c0_i32_1 = arith.constant 0 : i32
    %c0_i32_2 = arith.constant 0 : i32
    return %arg0, %c0_i32, %c0_i32_0, %arg1, %c0_i32_1 : i32, i32, i32, i32, i32
  }
  func.func @transform_1(%arg0: i32, %arg1: i32) -> (i32, i32) {
    %c0_i32 = arith.constant 0 : i32
    %c0_i32_0 = arith.constant 0 : i32
    %c0_i32_1 = arith.constant 0 : i32
    return %c0_i32, %c0_i32_0 : i32, i32
  }
  func.func @transform_2(%arg0: i32, %arg1: i32) -> (i32, i32) {
    %c0_i32 = arith.constant 0 : i32
    %c0_i32_0 = arith.constant 0 : i32
    %c0_i32_1 = arith.constant 0 : i32
    return %c0_i32, %c0_i32_0 : i32, i32
  }
  func.func @transform_3(%arg0: i32, %arg1: i32) -> (i32, i32) {
    %c0_i32 = arith.constant 0 : i32
    %c0_i32_0 = arith.constant 0 : i32
    %c0_i32_1 = arith.constant 0 : i32
    return %c0_i32, %c0_i32_0 : i32, i32
  }
  func.func @transform_4(%arg0: i32, %arg1: i32) -> (i32, i32, i32) {
    %c0_i32 = arith.constant 0 : i32
    %c0_i32_0 = arith.constant 0 : i32
    return %arg0, %arg1, %c0_i32 : i32, i32, i32
  }
}

module attributes {stable_mosaic.version = 11 : i64} {
  func.func @_transition_kernel(%arg0: i32, %arg1: i32, %arg2: memref<1x2x2x32x4xbf16, #tpu.memory_space<vmem>>, %arg3: memref<1x4xf32, #tpu.memory_space<vmem>>, %arg4: memref<1x4xf32, #tpu.memory_space<vmem>>, %arg5: memref<4x128xbf16, #tpu.memory_space<vmem>>, %arg6: memref<1x32x128xf32, #tpu.memory_space<vmem>>) attributes {dimension_semantics = [#tpu.dimension_semantics<parallel>, #tpu.dimension_semantics<parallel>], iteration_bounds = array<i64: 2, 2>, scalar_prefetch = 0 : i64, scratch_operands = 0 : i64, tpu.core_type = #tpu.core_type<tc>, window_params = [{transform_indices = @transform_0, window_bounds = array<i64: 1, 2, 2, 32, 4>}, {pipeline_mode = #tpu.pipeline_mode<synchronous>, transform_indices = @transform_1, window_bounds = array<i64: 1, 4>}, {pipeline_mode = #tpu.pipeline_mode<synchronous>, transform_indices = @transform_2, window_bounds = array<i64: 1, 4>}, {pipeline_mode = #tpu.pipeline_mode<synchronous>, transform_indices = @transform_3, window_bounds = array<i64: 4, 128>}, {transform_indices = @transform_4, window_bounds = array<i64: 1, 32, 128>}]} {
    %c0 = arith.constant 0 : index
    %c0_0 = arith.constant 0 : index
    %c0_1 = arith.constant 0 : index
    %c0_2 = arith.constant 0 : index
    %c0_3 = arith.constant 0 : index
    %0 = vector.load %arg2[%c0, %c0_0, %c0_1, %c0_2, %c0_3] : memref<1x2x2x32x4xbf16, #tpu.memory_space<vmem>>, vector<1x2x2x32x4xbf16>
    %1 = vector.shape_cast %0 : vector<1x2x2x32x4xbf16> to vector<2x2x32x4xbf16>
    %2 = arith.extf %1 : vector<2x2x32x4xbf16> to vector<2x2x32x4xf32>
    %c0_4 = arith.constant 0 : index
    %c0_5 = arith.constant 0 : index
    %3 = vector.load %arg3[%c0_4, %c0_5] : memref<1x4xf32, #tpu.memory_space<vmem>>, vector<1x4xf32>
    %4 = vector.shape_cast %3 : vector<1x4xf32> to vector<1x1x1x4xf32>
    %5 = vector.broadcast %4 : vector<1x1x1x4xf32> to vector<2x2x32x4xf32>
    %6 = arith.mulf %2, %5 : vector<2x2x32x4xf32>
    %c0_6 = arith.constant 0 : index
    %c0_7 = arith.constant 0 : index
    %7 = vector.load %arg4[%c0_6, %c0_7] : memref<1x4xf32, #tpu.memory_space<vmem>>, vector<1x4xf32>
    %8 = vector.shape_cast %7 : vector<1x4xf32> to vector<1x1x1x4xf32>
    %9 = vector.broadcast %8 : vector<1x1x1x4xf32> to vector<2x2x32x4xf32>
    %10 = arith.addf %6, %9 : vector<2x2x32x4xf32>
    %cst = arith.constant 0.000000e+00 : f32
    %11 = vector.broadcast %cst : f32 to vector<2x2x32x4xf32>
    %12 = arith.maximumf %10, %11 : vector<2x2x32x4xf32>
    %13 = vector.extract_strided_slice %12 {offsets = [0, 0, 0, 0], sizes = [1, 1, 32, 4], strides = [1, 1, 1, 1]} : vector<2x2x32x4xf32> to vector<1x1x32x4xf32>
    %14 = vector.shape_cast %13 : vector<1x1x32x4xf32> to vector<32x4xf32>
    %15 = vector.extract_strided_slice %12 {offsets = [0, 1, 0, 0], sizes = [1, 1, 32, 4], strides = [1, 1, 1, 1]} : vector<2x2x32x4xf32> to vector<1x1x32x4xf32>
    %16 = vector.shape_cast %15 : vector<1x1x32x4xf32> to vector<32x4xf32>
    %17 = arith.addf %14, %16 : vector<32x4xf32>
    %18 = vector.extract_strided_slice %12 {offsets = [1, 0, 0, 0], sizes = [1, 1, 32, 4], strides = [1, 1, 1, 1]} : vector<2x2x32x4xf32> to vector<1x1x32x4xf32>
    %19 = vector.shape_cast %18 : vector<1x1x32x4xf32> to vector<32x4xf32>
    %20 = vector.extract_strided_slice %12 {offsets = [1, 1, 0, 0], sizes = [1, 1, 32, 4], strides = [1, 1, 1, 1]} : vector<2x2x32x4xf32> to vector<1x1x32x4xf32>
    %21 = vector.shape_cast %20 : vector<1x1x32x4xf32> to vector<32x4xf32>
    %22 = arith.addf %19, %21 : vector<32x4xf32>
    %23 = arith.addf %17, %22 : vector<32x4xf32>
    %24 = arith.truncf %23 : vector<32x4xf32> to vector<32x4xbf16>
    %c0_8 = arith.constant 0 : index
    %c0_9 = arith.constant 0 : index
    %25 = vector.load %arg5[%c0_8, %c0_9] : memref<4x128xbf16, #tpu.memory_space<vmem>>, vector<4x128xbf16>
    %cst_10 = arith.constant dense<0.000000e+00> : vector<32x128xf32>
    %26 = tpu.matmul %24, %25, %cst_10 {dimension_numbers = #tpu.dot_dimension_numbers<[1], [0], [0], [1], [0, 0, 1, 1], [], []>} : vector<32x4xbf16>, vector<4x128xbf16>, vector<32x128xf32> -> vector<32x128xf32>
    %c0_11 = arith.constant 0 : index
    %c0_12 = arith.constant 0 : index
    %c0_13 = arith.constant 0 : index
    %27 = vector.load %arg6[%c0_11, %c0_12, %c0_13] : memref<1x32x128xf32, #tpu.memory_space<vmem>>, vector<1x32x128xf32>
    %28 = vector.shape_cast %27 : vector<1x32x128xf32> to vector<32x128xf32>
    %29 = vector.shape_cast %26 : vector<32x128xf32> to vector<1x32x128xf32>
    tpu.vector_store %arg6[%c0_11, %c0_12, %c0_13], %29 {strides = array<i32>} : memref<1x32x128xf32, #tpu.memory_space<vmem>>, vector<1x32x128xf32>,
    return
  }
  func.func @transform_0(%arg0: i32, %arg1: i32) -> (i32, i32, i32, i32, i32) {
    %c0_i32 = arith.constant 0 : i32
    %c0_i32_0 = arith.constant 0 : i32
    %c0_i32_1 = arith.constant 0 : i32
    %c0_i32_2 = arith.constant 0 : i32
    return %arg0, %c0_i32, %c0_i32_0, %arg1, %c0_i32_1 : i32, i32, i32, i32, i32
  }
  func.func @transform_1(%arg0: i32, %arg1: i32) -> (i32, i32) {
    %c0_i32 = arith.constant 0 : i32
    %c0_i32_0 = arith.constant 0 : i32
    %c0_i32_1 = arith.constant 0 : i32
    return %c0_i32, %c0_i32_0 : i32, i32
  }
  func.func @transform_2(%arg0: i32, %arg1: i32) -> (i32, i32) {
    %c0_i32 = arith.constant 0 : i32
    %c0_i32_0 = arith.constant 0 : i32
    %c0_i32_1 = arith.constant 0 : i32
    return %c0_i32, %c0_i32_0 : i32, i32
  }
  func.func @transform_3(%arg0: i32, %arg1: i32) -> (i32, i32) {
    %c0_i32 = arith.constant 0 : i32
    %c0_i32_0 = arith.constant 0 : i32
    %c0_i32_1 = arith.constant 0 : i32
    return %c0_i32, %c0_i32_0 : i32, i32
  }
  func.func @transform_4(%arg0: i32, %arg1: i32) -> (i32, i32, i32) {
    %c0_i32 = arith.constant 0 : i32
    %c0_i32_0 = arith.constant 0 : i32
    return %arg0, %arg1, %c0_i32 : i32, i32, i32
  }
}

</mosaic_0001>

<bundles_post_ra>
// kernel: transition_forward.1
= control target key start
LH: loop header
LB: loop body
LE: loop exit
PB: predicated region body
PF: predicated region fallthrough
CT: control target
= control target key end

     0   :  { %s757_s15 = smov 0   ;;  %s759_s16 = smov 0   ;;  %s904_s0 = inlined_call_operand.vmem [shape: bf16[2,2,2,64,4], index: 0, kind: input, shape index: {}]   ;;  %s905_s1 = inlined_call_operand.vmem [shape: f32[1,4], index: 1, kind: input, shape index: {}]   ;;  %s906_s2 = inlined_call_operand.vmem [shape: f32[1,4], index: 2, kind: input, shape index: {}]   ;;  %s907_s3 = inlined_call_operand.vmem [shape: bf16[4,128], index: 3, kind: input, shape index: {}]   ;;  %s908_s4 = inlined_call_operand.vmem [shape: f32[2,64,128], index: 4, kind: output, shape index: {}]  }
   0x1   :  { %s761_s17 = smov 0   ;;  %s763_s18 = smov 0  }
   0x2   :  { %s765_s19 = smov 0   ;;  %s767_s20 = smov 0  }
   0x3   :  { %s769_s21 = smov 0  }
   0x4 LB: > { %s23_s22 = sadd.s32 1, %s722_s19  ;;  %s26_s23 = sadd.s32 1, %s726_s20  ;;  %s730_s21 = sphi %s769_s21, %s14_s21   ;;  %s726_s20 = sphi %s767_s20, %s914_s20   ;;  %s722_s19 = sphi %s765_s19, %s913_s19   ;;  %s718_s18 = sphi %s763_s18, %s912_s18   ;;  %s714_s17 = sphi %s761_s17, %s911_s17   ;;  %s710_s16 = sphi %s759_s16, %s910_s16   ;;  %s706_s15 = sphi %s757_s15, %s909_s15  }
   0x5   : > { %p24_p0 = scmp.ge.s32.totalorder %s23_s22, 2  ;;  %p42_p1 = scmp.ne.s32.totalorder %s710_s16, %s706_s15 }
   0x6   : > { %p43_p2 = scmp.eq.s32.totalorder %s730_s21, 0  ;;  %s35_s27 = sadd.s32 1, %s710_s16 }
   0x7   : > { %s916_s22 = smov (%p24_p0, %s23_s22), 0  ;;  %s918_s23 = smov (!%p24_p0, %s26_s23), %s726_s20 }
   0x8   : > { %p44_p3 = por %p43_p2, %p42_p1  ;;  %p28_p4 = scmp.ge.s32.totalorder %s918_s23, 2 }
   0x9   : > { %s31_s24 = ssub.s32 %s722_s19, %s916_s22  ;;  %p564_p6 = scmp.ge.s32.totalorder %s730_s21, 4 }
   0xa   : > { %s920_s23 = smov (%p28_p4, %s918_s23), 0 }
   0xb   : > { %s30_s25 = ssub.s32 %s726_s20, %s920_s23  ;;  %168 = sbr.rel (%p564_p6) target bundleno = 31 (0x1f), region = 28 }
   0xc   : > { %s32_s26 = sor.u32 %s31_s24, %s30_s25 }
   0xd   : > { %p33_p5 = scmp.eq.s32.totalorder %s32_s26, 0 }
   0xf   : > { %s808_s28 = scalar_select %p33_p5, %s710_s16, %s35_s27  }
  0x10   : > { %171 = sbr.rel (!%p44_p3) target bundleno = 31 (0x1f), region = 32  ;;  %s173_s29 = sand.u32 (%p44_p3), 1, %s710_s16  }
  0x11   : > { %s566_s30 = sshll.u32 (%p44_p3), %s722_s19, 2  ;;  %s565_s5 = sshll.u32 (%p44_p3), %s173_s29, 6 }
  0x12   : > { %s567_s6 = sshll.u32 (%p44_p3), %s726_s20, 5  ;;  %s175_s12 = scalar_lea.vmem (%p44_p3), [#allocation2], %s565_s5 }
  0x13   : > { %s178_s7 = sadd.s32 (%p44_p3), %s567_s6, %s566_s30 }
  0x14   : > { %s568_s8 = sshll.u32 (%p44_p3), %s178_s7, 2 }
  0x15   : > { %s180_s11 = scalar_lea.vmem %s904_s0, %s568_s8 }
  0x16   : > { %v197_v0 = vld [vmem:[%s180_s11] sm:$0xff]   ;;  %v201_v1 = vld [vmem:[%s180_s11 + $0x8] sm:$0xff]  }
  0x17   : > { %v205_v2 = vld [vmem:[%s180_s11 + $0x20] sm:$0xff]   ;;  %198 = vst [vmem:[%s175_s12] sm:$0xff] %v197_v0   ;;  %v209_v3 = vld [vmem:[%s180_s11 + $0x28] sm:$0xff]  }
  0x18   : > { %202 = vst [vmem:[%s175_s12 + $0x8] sm:$0xff] %v201_v1   ;;  %v213_v4 = vld [vmem:[%s180_s11 + $0x40] sm:$0xff]   ;;  %v217_v5 = vld [vmem:[%s180_s11 + $0x48] sm:$0xff]  }
  0x19   : > { %206 = vst [vmem:[%s175_s12 + $0x10] sm:$0xff] %v205_v2   ;;  %v221_v6 = vld [vmem:[%s180_s11 + $0x60] sm:$0xff]   ;;  %v225_v7 = vld [vmem:[%s180_s11 + $0x68] sm:$0xff]  }
  0x1a   : > { %210 = vst [vmem:[%s175_s12 + $0x18] sm:$0xff] %v209_v3  }
  0x1b   : > { %214 = vst [vmem:[%s175_s12 + $0x20] sm:$0xff] %v213_v4  }
  0x1c   : > { %218 = vst [vmem:[%s175_s12 + $0x28] sm:$0xff] %v217_v5  }
  0x1d   : > { %222 = vst [vmem:[%s175_s12 + $0x30] sm:$0xff] %v221_v6  }
  0x1e   : > { %226 = vst [vmem:[%s175_s12 + $0x38] sm:$0xff] %v225_v7  }
  0x1f PF: > { %p569_p7 = scmp.ge.s32.totalorder %s730_s21, 1  ;;  %p283_p8 = scmp.lt.s32.totalorder %s730_s21, 5 }
  0x21   : > { %p284_p9 = pnand %p569_p7, %p283_p8 }
  0x22   : > { %s290_s24 = sand.u32 (!%p284_p9), 1, %s706_s15   ;;  %s571_s5 = sshll.u32 (!%p284_p9), %s714_s17, 2 }
  0x23   : > { %287 = sbr.rel (%p284_p9) target bundleno = 201 (0xc9), region = 73  ;;  %s570_s25 = sshll.u32 (!%p284_p9), %s290_s24, 6 }
  0x24   : > { %s828_s29 = scalar_lea.vmem (!%p284_p9), [#allocation2], %s570_s25  ;;  %p321_p10 = scmp.lt.s32.totalorder (!%p284_p9), %s718_s18, 1 }
  0x25   : > { %p323_p11 = scmp.lt.s32.totalorder (!%p284_p9), %s571_s5, 7 }
  0x28   : > { %v433_v8 = vld [vmem:[%s907_s3] sm:$0x3]  ;;  %vm441_vm0 = vcmask 1041408   ;;  %v611_v12 = vld [vmem:[%s828_s29 + $0x10] sm:$0xff]   ;;  %vm434_vm1 = vcmask 31744   ;;  %v610_v40 = vld [vmem:[%s828_s29 + $0x8] sm:$0xff]  }
  0x29   : > { %v443_v9 = vsel %vm441_vm0, %v433_v8, 0  ;;  %v826_v10 = vld [vmem:[%s905_s1] ss:$0 sm:$0xff]  ;;  %v588_v16 = vunpack.c.l.bf16 %v611_v12  ;;  %v589_v17 = vunpack.c.h.bf16 %v611_v12  ;;  %v615_v18 = vld [vmem:[%s828_s29 + $0x30] sm:$0xff]   ;;  %v612_v45 = vld [vmem:[%s828_s29 + $0x18] sm:$0xff]   ;;  %v584_v54 = vunpack.c.l.bf16 %v610_v40  ;;  %s922_s18 = smov (!%p321_p10, %s718_s18), 1 }
  0x2a   : > { %452 = vmatpush.bf16.msra.mxu0 %v443_v9  ;;  %617 = vmatpush.bf16.msra.mxu1 %v443_v9  ;;  %v579_v11 = vld [vmem:[%s828_s29] sm:$0xff]   ;;  %v604_v22 = vunpack.c.l.bf16 %v615_v18  ;;  %v605_v23 = vunpack.c.h.bf16 %v615_v18  ;;  %v614_v50 = vld [vmem:[%s828_s29 + $0x28] sm:$0xff]   ;;  %v616_v51 = vld [vmem:[%s828_s29 + $0x38] sm:$0xff]   ;;  %v585_v55 = vunpack.c.h.bf16 %v610_v40  ;;  %v592_v58 = vunpack.c.l.bf16 %v612_v45  ;;  %s924_s5 = smov (!%p323_p11, %s571_s5), 7  ;;  %s572_s6 = sshll.u32 %s922_s18, 3 }
  0x2b   : > { %v613_v13 = vld [vmem:[%s828_s29 + $0x20] sm:$0xff]   ;;  %v580_v14 = vunpack.c.l.bf16 %v579_v11  ;;  %v581_v15 = vunpack.c.h.bf16 %v579_v11  ;;  %v371_v26 = vmul.f32 %v826_v10, %v588_v16  ;;  %v372_v27 = vmul.f32 %v826_v10, %v589_v17  ;;  %s326_s7 = sadd.s32 %s572_s6, %s924_s5 }
  0x2c   : > { %v837_v19 = vld [vmem:[%s906_s2] ss:$0 sm:$0xff]  ;;  %v596_v20 = vunpack.c.l.bf16 %v613_v13  ;;  %v597_v21 = vunpack.c.h.bf16 %v613_v13  ;;  %v379_v30 = vmul.f32 %v826_v10, %v604_v22  ;;  %v380_v31 = vmul.f32 %v826_v10, %v605_v23  ;;  %s573_s8 = sshll.u32 %s326_s7, 3 }
  0x2d   : > { %v367_v24 = vmul.f32 %v826_v10, %v580_v14  ;;  %v368_v25 = vmul.f32 %v826_v10, %v581_v15  ;;  %v391_v34 = vadd.f32 %v837_v19, %v371_v26  ;;  %v392_v35 = vadd.f32 %v837_v19, %v372_v27  ;;  %s328_s11 = scalar_lea.vmem %s908_s4, %s573_s8 }
  0x2e   : > { %v375_v28 = vmul.f32 %v826_v10, %v596_v20  ;;  %v376_v29 = vmul.f32 %v826_v10, %v597_v21  ;;  %v399_v38 = vadd.f32 %v837_v19, %v379_v30  ;;  %v400_v39 = vadd.f32 %v837_v19, %v380_v31 }
  0x2f   : > { %v387_v32 = vadd.f32 %v837_v19, %v367_v24  ;;  %v388_v33 = vadd.f32 %v837_v19, %v368_v25  ;;  %v407_v43 = vmax.f32 %v391_v34, 0.0  ;;  %v408_v44 = vmax.f32 %v392_v35, 0.0 }
  0x30   : > { %v395_v36 = vadd.f32 %v837_v19, %v375_v28  ;;  %v396_v37 = vadd.f32 %v837_v19, %v376_v29  ;;  %v415_v48 = vmax.f32 %v399_v38, 0.0  ;;  %v416_v49 = vmax.f32 %v400_v39, 0.0 }
  0x31   : > { %v403_v41 = vmax.f32 %v387_v32, 0.0  ;;  %v404_v42 = vmax.f32 %v388_v33, 0.0  ;;  %v593_v59 = vunpack.c.h.bf16 %v612_v45  ;;  %v600_v60 = vunpack.c.l.bf16 %v614_v50 }
  0x32   : > { %v411_v46 = vmax.f32 %v395_v36, 0.0  ;;  %v412_v47 = vmax.f32 %v396_v37, 0.0  ;;  %v601_v61 = vunpack.c.h.bf16 %v614_v50  ;;  %v608_v62 = vunpack.c.l.bf16 %v616_v51 }
  0x33   : > { %v419_v52 = vadd.f32 %v407_v43, %v403_v41  ;;  %v420_v53 = vadd.f32 %v408_v44, %v404_v42  ;;  %v609_v63 = vunpack.c.h.bf16 %v616_v51  ;;  %v369_v2 = vmul.f32 %v826_v10, %v584_v54 }
  0x34   : > { %v423_v56 = vadd.f32 %v415_v48, %v411_v46  ;;  %v424_v57 = vadd.f32 %v416_v49, %v412_v47  ;;  %v370_v3 = vmul.f32 %v826_v10, %v585_v55  ;;  %v373_v4 = vmul.f32 %v826_v10, %v592_v58 }
  0x35   : > { %v374_v5 = vmul.f32 %v826_v10, %v593_v59  ;;  %v377_v6 = vmul.f32 %v826_v10, %v600_v60  ;;  %v378_v7 = vmul.f32 %v826_v10, %v601_v61  ;;  %v381_v9 = vmul.f32 %v826_v10, %v608_v62 }
  0x36   : > { %v427_v0 = vadd.f32 %v423_v56, %v419_v52  ;;  %v428_v1 = vadd.f32 %v424_v57, %v420_v53  ;;  %v382_v11 = vmul.f32 %v826_v10, %v609_v63  ;;  %v389_v12 = vadd.f32 %v837_v19, %v369_v2 }
  0x37   : > { %v390_v13 = vadd.f32 %v837_v19, %v370_v3  ;;  %v393_v14 = vadd.f32 %v837_v19, %v373_v4  ;;  %v394_v15 = vadd.f32 %v837_v19, %v374_v5  ;;  %v397_v16 = vadd.f32 %v837_v19, %v377_v6 }
  0x38   : > { %v431_v8 = vpack.c.bf16 %v428_v1, %v427_v0  ;;  %v398_v17 = vadd.f32 %v837_v19, %v378_v7  ;;  %v401_v18 = vadd.f32 %v837_v19, %v381_v9  ;;  %v402_v20 = vadd.f32 %v837_v19, %v382_v11 }
  0x39   : > { %v405_v21 = vmax.f32 %v389_v12, 0.0  ;;  %v406_v10 = vmax.f32 %v390_v13, 0.0  ;;  %v409_v22 = vmax.f32 %v393_v14, 0.0  ;;  %v410_v23 = vmax.f32 %v394_v15, 0.0 }
  0x3a   : > { %574 = vmatmul.msk.bf16.vlgmr.msra.gmra.mxu0 %vm434_vm1, %v431_v8  ;;  %v413_v24 = vmax.f32 %v397_v16, 0.0  ;;  %v414_v25 = vmax.f32 %v398_v17, 0.0  ;;  %v417_v26 = vmax.f32 %v401_v18, 0.0  ;;  %v418_v27 = vmax.f32 %v402_v20, 0.0 }
  0x3b   : > { %v421_v28 = vadd.f32 %v409_v22, %v405_v21  ;;  %v422_v29 = vadd.f32 %v410_v23, %v406_v10 }
  0x3c   : > { %v425_v30 = vadd.f32 %v417_v26, %v413_v24  ;;  %v426_v31 = vadd.f32 %v418_v27, %v414_v25 }
  0x3e   : > { %v429_v32 = vadd.f32 %v425_v30, %v421_v28  ;;  %v430_v33 = vadd.f32 %v426_v31, %v422_v29 }
  0x40   : > { %v432_v34 = vpack.c.bf16 %v430_v33, %v429_v32 }
  0x42   : > { %575 = vmatmul.msk.bf16.vlgmr.msra.gmra.mxu1 %vm434_vm1, %v432_v34 }
  0xb7   : > { %v454_v19 = vpop.f32.mrf.mxu0 }
  0xb8   : > { %464 = vst [vmem:[%s328_s11] sm:$0xff] %v454_v19 }
  0xbf   : > { %v456_v35 = vpop.f32.mrf.mxu0  ;;  %v459_v36 = vpop.f32.mrf.mxu1 }
  0xc0   : > { %465 = vst [vmem:[%s328_s11 + $0x8] sm:$0xff] %v456_v35 }
  0xc1   : > { %466 = vst [vmem:[%s328_s11 + $0x10] sm:$0xff] %v459_v36 }
  0xc7   : > { %v461_v37 = vpop.f32.mrf.mxu1 }
  0xc8   : > { %467 = vst [vmem:[%s328_s11 + $0x18] sm:$0xff] %v461_v37 }
  0xc9 PF: > { %s14_s21 = sadd.s32 1, %s730_s21   ;;  %s909_s15 = smov %s710_s16 }
  0xca   : > { %p11_p12 = scmp.ge.s32.totalorder %s14_s21, 6   ;;  %s910_s16 = smov %s808_s28 }
  0xcb   : > { %s911_s17 = smov %s722_s19  ;;  %s912_s18 = smov %s726_s20 }
  0xcc   : > { %s913_s19 = smov %s916_s22  ;;  %s914_s20 = smov %s920_s23 }
  0xcd   :  { %13 = sbr.rel (!%p11_p12) target bundleno = 4 (0x4), region = 112 }

// kernel: transition_forward.1
= control target key start
LH: loop header
LB: loop body
LE: loop exit
PB: predicated region body
PF: predicated region fallthrough
CT: control target
= control target key end

     0   :  { %s757_s15 = smov 0   ;;  %s759_s16 = smov 0   ;;  %s904_s0 = inlined_call_operand.vmem [shape: bf16[2,2,2,64,4], index: 0, kind: input, shape index: {}]   ;;  %s905_s1 = inlined_call_operand.vmem [shape: f32[1,4], index: 1, kind: input, shape index: {}]   ;;  %s906_s2 = inlined_call_operand.vmem [shape: f32[1,4], index: 2, kind: input, shape index: {}]   ;;  %s907_s3 = inlined_call_operand.vmem [shape: bf16[4,128], index: 3, kind: input, shape index: {}]   ;;  %s908_s4 = inlined_call_operand.vmem [shape: f32[2,64,128], index: 4, kind: output, shape index: {}]  }
   0x1   :  { %s761_s17 = smov 0   ;;  %s763_s18 = smov 0  }
   0x2   :  { %s765_s19 = smov 0   ;;  %s767_s20 = smov 0  }
   0x3   :  { %s769_s21 = smov 0  }
   0x4 LB: > { %s23_s22 = sadd.s32 1, %s722_s19  ;;  %s26_s23 = sadd.s32 1, %s726_s20  ;;  %s730_s21 = sphi %s769_s21, %s14_s21   ;;  %s726_s20 = sphi %s767_s20, %s914_s20   ;;  %s722_s19 = sphi %s765_s19, %s913_s19   ;;  %s718_s18 = sphi %s763_s18, %s912_s18   ;;  %s714_s17 = sphi %s761_s17, %s911_s17   ;;  %s710_s16 = sphi %s759_s16, %s910_s16   ;;  %s706_s15 = sphi %s757_s15, %s909_s15  }
   0x5   : > { %p24_p0 = scmp.ge.s32.totalorder %s23_s22, 2  ;;  %p42_p1 = scmp.ne.s32.totalorder %s710_s16, %s706_s15 }
   0x6   : > { %p43_p2 = scmp.eq.s32.totalorder %s730_s21, 0  ;;  %s35_s27 = sadd.s32 1, %s710_s16 }
   0x7   : > { %s916_s22 = smov (%p24_p0, %s23_s22), 0  ;;  %s918_s23 = smov (!%p24_p0, %s26_s23), %s726_s20 }
   0x8   : > { %p44_p3 = por %p43_p2, %p42_p1  ;;  %p28_p4 = scmp.ge.s32.totalorder %s918_s23, 2 }
   0x9   : > { %s31_s24 = ssub.s32 %s722_s19, %s916_s22  ;;  %p564_p6 = scmp.ge.s32.totalorder %s730_s21, 4 }
   0xa   : > { %s920_s23 = smov (%p28_p4, %s918_s23), 0 }
   0xb   : > { %s30_s25 = ssub.s32 %s726_s20, %s920_s23  ;;  %168 = sbr.rel (%p564_p6) target bundleno = 31 (0x1f), region = 28 }
   0xc   : > { %s32_s26 = sor.u32 %s31_s24, %s30_s25 }
   0xd   : > { %p33_p5 = scmp.eq.s32.totalorder %s32_s26, 0 }
   0xf   : > { %s808_s28 = scalar_select %p33_p5, %s710_s16, %s35_s27  }
  0x10   : > { %171 = sbr.rel (!%p44_p3) target bundleno = 31 (0x1f), region = 32  ;;  %s173_s29 = sand.u32 (%p44_p3), 1, %s710_s16  }
  0x11   : > { %s566_s30 = sshll.u32 (%p44_p3), %s722_s19, 2  ;;  %s565_s5 = sshll.u32 (%p44_p3), %s173_s29, 6 }
  0x12   : > { %s567_s6 = sshll.u32 (%p44_p3), %s726_s20, 5  ;;  %s175_s12 = scalar_lea.vmem (%p44_p3), [#allocation2], %s565_s5 }
  0x13   : > { %s178_s7 = sadd.s32 (%p44_p3), %s567_s6, %s566_s30 }
  0x14   : > { %s568_s8 = sshll.u32 (%p44_p3), %s178_s7, 2 }
  0x15   : > { %s180_s11 = scalar_lea.vmem %s904_s0, %s568_s8 }
  0x16   : > { %v197_v0 = vld [vmem:[%s180_s11] sm:$0xff]   ;;  %v201_v1 = vld [vmem:[%s180_s11 + $0x8] sm:$0xff]  }
  0x17   : > { %v205_v2 = vld [vmem:[%s180_s11 + $0x20] sm:$0xff]   ;;  %198 = vst [vmem:[%s175_s12] sm:$0xff] %v197_v0   ;;  %v209_v3 = vld [vmem:[%s180_s11 + $0x28] sm:$0xff]  }
  0x18   : > { %202 = vst [vmem:[%s175_s12 + $0x8] sm:$0xff] %v201_v1   ;;  %v213_v4 = vld [vmem:[%s180_s11 + $0x40] sm:$0xff]   ;;  %v217_v5 = vld [vmem:[%s180_s11 + $0x48] sm:$0xff]  }
  0x19   : > { %206 = vst [vmem:[%s175_s12 + $0x10] sm:$0xff] %v205_v2   ;;  %v221_v6 = vld [vmem:[%s180_s11 + $0x60] sm:$0xff]   ;;  %v225_v7 = vld [vmem:[%s180_s11 + $0x68] sm:$0xff]  }
  0x1a   : > { %210 = vst [vmem:[%s175_s12 + $0x18] sm:$0xff] %v209_v3  }
  0x1b   : > { %214 = vst [vmem:[%s175_s12 + $0x20] sm:$0xff] %v213_v4  }
  0x1c   : > { %218 = vst [vmem:[%s175_s12 + $0x28] sm:$0xff] %v217_v5  }
  0x1d   : > { %222 = vst [vmem:[%s175_s12 + $0x30] sm:$0xff] %v221_v6  }
  0x1e   : > { %226 = vst [vmem:[%s175_s12 + $0x38] sm:$0xff] %v225_v7  }
  0x1f PF: > { %p569_p7 = scmp.ge.s32.totalorder %s730_s21, 1  ;;  %p283_p8 = scmp.lt.s32.totalorder %s730_s21, 5 }
  0x21   : > { %p284_p9 = pnand %p569_p7, %p283_p8 }
  0x22   : > { %s290_s24 = sand.u32 (!%p284_p9), 1, %s706_s15   ;;  %s571_s5 = sshll.u32 (!%p284_p9), %s714_s17, 2 }
  0x23   : > { %287 = sbr.rel (%p284_p9) target bundleno = 201 (0xc9), region = 73  ;;  %s570_s25 = sshll.u32 (!%p284_p9), %s290_s24, 6 }
  0x24   : > { %s828_s29 = scalar_lea.vmem (!%p284_p9), [#allocation2], %s570_s25  ;;  %p321_p10 = scmp.lt.s32.totalorder (!%p284_p9), %s718_s18, 1 }
  0x25   : > { %p323_p11 = scmp.lt.s32.totalorder (!%p284_p9), %s571_s5, 7 }
  0x28   : > { %v433_v8 = vld [vmem:[%s907_s3] sm:$0x3]  ;;  %vm441_vm0 = vcmask 1041408   ;;  %v611_v12 = vld [vmem:[%s828_s29 + $0x10] sm:$0xff]   ;;  %vm434_vm1 = vcmask 31744   ;;  %v610_v40 = vld [vmem:[%s828_s29 + $0x8] sm:$0xff]  }
  0x29   : > { %v443_v9 = vsel %vm441_vm0, %v433_v8, 0  ;;  %v826_v10 = vld [vmem:[%s905_s1] ss:$0 sm:$0xff]  ;;  %v588_v16 = vunpack.c.l.bf16 %v611_v12  ;;  %v589_v17 = vunpack.c.h.bf16 %v611_v12  ;;  %v615_v18 = vld [vmem:[%s828_s29 + $0x30] sm:$0xff]   ;;  %v612_v45 = vld [vmem:[%s828_s29 + $0x18] sm:$0xff]   ;;  %v584_v54 = vunpack.c.l.bf16 %v610_v40  ;;  %s922_s18 = smov (!%p321_p10, %s718_s18), 1 }
  0x2a   : > { %452 = vmatpush.bf16.msra.mxu0 %v443_v9  ;;  %617 = vmatpush.bf16.msra.mxu1 %v443_v9  ;;  %v579_v11 = vld [vmem:[%s828_s29] sm:$0xff]   ;;  %v604_v22 = vunpack.c.l.bf16 %v615_v18  ;;  %v605_v23 = vunpack.c.h.bf16 %v615_v18  ;;  %v614_v50 = vld [vmem:[%s828_s29 + $0x28] sm:$0xff]   ;;  %v616_v51 = vld [vmem:[%s828_s29 + $0x38] sm:$0xff]   ;;  %v585_v55 = vunpack.c.h.bf16 %v610_v40  ;;  %v592_v58 = vunpack.c.l.bf16 %v612_v45  ;;  %s924_s5 = smov (!%p323_p11, %s571_s5), 7  ;;  %s572_s6 = sshll.u32 %s922_s18, 3 }
  0x2b   : > { %v613_v13 = vld [vmem:[%s828_s29 + $0x20] sm:$0xff]   ;;  %v580_v14 = vunpack.c.l.bf16 %v579_v11  ;;  %v581_v15 = vunpack.c.h.bf16 %v579_v11  ;;  %v371_v26 = vmul.f32 %v826_v10, %v588_v16  ;;  %v372_v27 = vmul.f32 %v826_v10, %v589_v17  ;;  %s326_s7 = sadd.s32 %s572_s6, %s924_s5 }
  0x2c   : > { %v837_v19 = vld [vmem:[%s906_s2] ss:$0 sm:$0xff]  ;;  %v596_v20 = vunpack.c.l.bf16 %v613_v13  ;;  %v597_v21 = vunpack.c.h.bf16 %v613_v13  ;;  %v379_v30 = vmul.f32 %v826_v10, %v604_v22  ;;  %v380_v31 = vmul.f32 %v826_v10, %v605_v23  ;;  %s573_s8 = sshll.u32 %s326_s7, 3 }
  0x2d   : > { %v367_v24 = vmul.f32 %v826_v10, %v580_v14  ;;  %v368_v25 = vmul.f32 %v826_v10, %v581_v15  ;;  %v391_v34 = vadd.f32 %v837_v19, %v371_v26  ;;  %v392_v35 = vadd.f32 %v837_v19, %v372_v27  ;;  %s328_s11 = scalar_lea.vmem %s908_s4, %s573_s8 }
  0x2e   : > { %v375_v28 = vmul.f32 %v826_v10, %v596_v20  ;;  %v376_v29 = vmul.f32 %v826_v10, %v597_v21  ;;  %v399_v38 = vadd.f32 %v837_v19, %v379_v30  ;;  %v400_v39 = vadd.f32 %v837_v19, %v380_v31 }
  0x2f   : > { %v387_v32 = vadd.f32 %v837_v19, %v367_v24  ;;  %v388_v33 = vadd.f32 %v837_v19, %v368_v25  ;;  %v407_v43 = vmax.f32 %v391_v34, 0.0  ;;  %v408_v44 = vmax.f32 %v392_v35, 0.0 }
  0x30   : > { %v395_v36 = vadd.f32 %v837_v19, %v375_v28  ;;  %v396_v37 = vadd.f32 %v837_v19, %v376_v29  ;;  %v415_v48 = vmax.f32 %v399_v38, 0.0  ;;  %v416_v49 = vmax.f32 %v400_v39, 0.0 }
  0x31   : > { %v403_v41 = vmax.f32 %v387_v32, 0.0  ;;  %v404_v42 = vmax.f32 %v388_v33, 0.0  ;;  %v593_v59 = vunpack.c.h.bf16 %v612_v45  ;;  %v600_v60 = vunpack.c.l.bf16 %v614_v50 }
  0x32   : > { %v411_v46 = vmax.f32 %v395_v36, 0.0  ;;  %v412_v47 = vmax.f32 %v396_v37, 0.0  ;;  %v601_v61 = vunpack.c.h.bf16 %v614_v50  ;;  %v608_v62 = vunpack.c.l.bf16 %v616_v51 }
  0x33   : > { %v419_v52 = vadd.f32 %v407_v43, %v403_v41  ;;  %v420_v53 = vadd.f32 %v408_v44, %v404_v42  ;;  %v609_v63 = vunpack.c.h.bf16 %v616_v51  ;;  %v369_v2 = vmul.f32 %v826_v10, %v584_v54 }
  0x34   : > { %v423_v56 = vadd.f32 %v415_v48, %v411_v46  ;;  %v424_v57 = vadd.f32 %v416_v49, %v412_v47  ;;  %v370_v3 = vmul.f32 %v826_v10, %v585_v55  ;;  %v373_v4 = vmul.f32 %v826_v10, %v592_v58 }
  0x35   : > { %v374_v5 = vmul.f32 %v826_v10, %v593_v59  ;;  %v377_v6 = vmul.f32 %v826_v10, %v600_v60  ;;  %v378_v7 = vmul.f32 %v826_v10, %v601_v61  ;;  %v381_v9 = vmul.f32 %v826_v10, %v608_v62 }
  0x36   : > { %v427_v0 = vadd.f32 %v423_v56, %v419_v52  ;;  %v428_v1 = vadd.f32 %v424_v57, %v420_v53  ;;  %v382_v11 = vmul.f32 %v826_v10, %v609_v63  ;;  %v389_v12 = vadd.f32 %v837_v19, %v369_v2 }
  0x37   : > { %v390_v13 = vadd.f32 %v837_v19, %v370_v3  ;;  %v393_v14 = vadd.f32 %v837_v19, %v373_v4  ;;  %v394_v15 = vadd.f32 %v837_v19, %v374_v5  ;;  %v397_v16 = vadd.f32 %v837_v19, %v377_v6 }
  0x38   : > { %v431_v8 = vpack.c.bf16 %v428_v1, %v427_v0  ;;  %v398_v17 = vadd.f32 %v837_v19, %v378_v7  ;;  %v401_v18 = vadd.f32 %v837_v19, %v381_v9  ;;  %v402_v20 = vadd.f32 %v837_v19, %v382_v11 }
  0x39   : > { %v405_v21 = vmax.f32 %v389_v12, 0.0  ;;  %v406_v10 = vmax.f32 %v390_v13, 0.0  ;;  %v409_v22 = vmax.f32 %v393_v14, 0.0  ;;  %v410_v23 = vmax.f32 %v394_v15, 0.0 }
  0x3a   : > { %574 = vmatmul.msk.bf16.vlgmr.msra.gmra.mxu0 %vm434_vm1, %v431_v8  ;;  %v413_v24 = vmax.f32 %v397_v16, 0.0  ;;  %v414_v25 = vmax.f32 %v398_v17, 0.0  ;;  %v417_v26 = vmax.f32 %v401_v18, 0.0  ;;  %v418_v27 = vmax.f32 %v402_v20, 0.0 }
  0x3b   : > { %v421_v28 = vadd.f32 %v409_v22, %v405_v21  ;;  %v422_v29 = vadd.f32 %v410_v23, %v406_v10 }
  0x3c   : > { %v425_v30 = vadd.f32 %v417_v26, %v413_v24  ;;  %v426_v31 = vadd.f32 %v418_v27, %v414_v25 }
  0x3e   : > { %v429_v32 = vadd.f32 %v425_v30, %v421_v28  ;;  %v430_v33 = vadd.f32 %v426_v31, %v422_v29 }
  0x40   : > { %v432_v34 = vpack.c.bf16 %v430_v33, %v429_v32 }
  0x42   : > { %575 = vmatmul.msk.bf16.vlgmr.msra.gmra.mxu1 %vm434_vm1, %v432_v34 }
  0xb7   : > { %v454_v19 = vpop.f32.mrf.mxu0 }
  0xb8   : > { %464 = vst [vmem:[%s328_s11] sm:$0xff] %v454_v19 }
  0xbf   : > { %v456_v35 = vpop.f32.mrf.mxu0  ;;  %v459_v36 = vpop.f32.mrf.mxu1 }
  0xc0   : > { %465 = vst [vmem:[%s328_s11 + $0x8] sm:$0xff] %v456_v35 }
  0xc1   : > { %466 = vst [vmem:[%s328_s11 + $0x10] sm:$0xff] %v459_v36 }
  0xc7   : > { %v461_v37 = vpop.f32.mrf.mxu1 }
  0xc8   : > { %467 = vst [vmem:[%s328_s11 + $0x18] sm:$0xff] %v461_v37 }
  0xc9 PF: > { %s14_s21 = sadd.s32 1, %s730_s21   ;;  %s909_s15 = smov %s710_s16 }
  0xca   : > { %p11_p12 = scmp.ge.s32.totalorder %s14_s21, 6   ;;  %s910_s16 = smov %s808_s28 }
  0xcb   : > { %s911_s17 = smov %s722_s19  ;;  %s912_s18 = smov %s726_s20 }
  0xcc   : > { %s913_s19 = smov %s916_s22  ;;  %s914_s20 = smov %s920_s23 }
  0xcd   :  { %13 = sbr.rel (!%p11_p12) target bundleno = 4 (0x4), region = 112 }

</bundles_post_ra>
